<compile_context>
chip_gen: v6e
topology: v6e:2x2x1
jax: 0.10.0
libtpu: 0.0.40
codegen_flags: <defaults>
</compile_context>

<pallas_src>
import functools

import jax
import jax.numpy as jnp
from jax.experimental import pallas as pl
from jax.experimental.pallas import tpu as pltpu

LANE = 128      # TPU lane width
SUBLANE = 8     # f32 sublane tile


def _round_up(n, m):
    return ((n + m - 1) // m) * m


# --------------------------------------------------------------------------
# Kernel
# --------------------------------------------------------------------------
def dqn_kernel(x_ref, p_ref, alpha_ref, o_ref, *,
               w1_off, w1_rows, w2_off, w3_off, w4_off, hid_rows, bias_off):
    """Whole forward pass: 4 matmuls + biases + 3 PReLUs, on one VMEM param slab."""
    x = x_ref[...]                                              # (B, in_pad)

    # Static, 8-aligned, full-lane-width slices of the packed slab (free views).
    w1 = p_ref[w1_off:w1_off + w1_rows, :]                      # (in_pad, 128)
    w2 = p_ref[w2_off:w2_off + hid_rows, :]                     # (128, 128)
    w3 = p_ref[w3_off:w3_off + hid_rows, :]                     # (128, 128)
    w4 = p_ref[w4_off:w4_off + hid_rows, :]                     # (128, 128)
    b = p_ref[bias_off:bias_off + SUBLANE, :]                   # (8, 128): rows 0..3

    # PReLU alphas from the scalar path (SMEM).
    a1 = alpha_ref[0]
    a2 = alpha_ref[1]
    a3 = alpha_ref[2]

    def prelu(h, a):
        # nn.PReLU() default: single learnable scalar, elementwise.
        return jnp.where(h >= 0, h, a * h)

    h = jnp.dot(x, w1, preferred_element_type=jnp.float32) + b[0]
    h = prelu(h, a1)
    h = jnp.dot(h, w2, preferred_element_type=jnp.float32) + b[1]
    h = prelu(h, a2)
    h = jnp.dot(h, w3, preferred_element_type=jnp.float32) + b[2]
    h = prelu(h, a3)
    h = jnp.dot(h, w4, preferred_element_type=jnp.float32) + b[3]

    o_ref[...] = h.astype(o_ref.dtype)                          # lane-dense (B, 128)


# --------------------------------------------------------------------------
# Parameter init / packing
# --------------------------------------------------------------------------
def init_dqn_params(key, layer_sizes):
    """Mimics PyTorch defaults.

    nn.Linear: weight (out,in), bias (out,), both U(-1/sqrt(in), 1/sqrt(in)).
    Stored pre-transposed as (in, out).  nn.PReLU(): scalar init 0.25.
    """
    in_sz, hid, out_sz = layer_sizes
    dims = [(in_sz, hid), (hid, hid), (hid, hid), (hid, out_sz)]
    params = []
    for fan_in, fan_out in dims:
        key, kw, kb = jax.random.split(key, 3)
        bound = 1.0 / jnp.sqrt(jnp.float32(fan_in))
        w = jax.random.uniform(kw, (fan_in, fan_out), jnp.float32, -bound, bound)
        b = jax.random.uniform(kb, (fan_out,), jnp.float32, -bound, bound)
        params.append((w, b))
    alphas = jnp.array([0.25, 0.25, 0.25, 0.0], jnp.float32)    # 3 used, 1 pad
    return params, alphas


def pack_dqn_params(params):
    """Pack all weights + biases into one lane-dense (R, 128) f32 slab."""
    (w1, b1), (w2, b2), (w3, b3), (w4, b4) = params
    in_sz, hid = w1.shape
    out_sz = w4.shape[1]
    in_pad = _round_up(in_sz, SUBLANE)
    hid_pad = LANE                      # carry hidden activations at 128 lanes

    def pad2(w, rows, cols):
        return jnp.pad(w, ((0, rows - w.shape[0]), (0, cols - w.shape[1])))

    w1p = pad2(w1, in_pad, hid_pad)     # (16, 128)
    w2p = pad2(w2, hid_pad, hid_pad)    # (128, 128)
    w3p = pad2(w3, hid_pad, hid_pad)    # (128, 128)
    w4p = pad2(w4, hid_pad, LANE)       # (128, 128)

    bias = jnp.zeros((SUBLANE, LANE), jnp.float32)
    bias = bias.at[0, :hid].set(b1)
    bias = bias.at[1, :hid].set(b2)
    bias = bias.at[2, :hid].set(b3)
    bias = bias.at[3, :out_sz].set(b4)

    slab = jnp.concatenate([w1p, w2p, w3p, w4p, bias], axis=0)  # (408, 128)

    meta = dict(
        in_sz=in_sz,
        in_pad=in_pad,
        out_sz=out_sz,
        w1_off=0, w1_rows=in_pad,
        w2_off=in_pad,
        w3_off=in_pad + hid_pad,
        w4_off=in_pad + 2 * hid_pad,
        hid_rows=hid_pad,
        bias_off=in_pad + 3 * hid_pad,
    )
    return slab, meta


# --------------------------------------------------------------------------
# Wrapper
# --------------------------------------------------------------------------
def dqn_forward(x, slab, alphas, meta):
    batch, in_sz = x.shape
    assert in_sz == meta["in_sz"]
    b_pad = _round_up(batch, SUBLANE)
    x_p = jnp.pad(x, ((0, b_pad - batch), (0, meta["in_pad"] - in_sz)))

    kernel = functools.partial(
        dqn_kernel,
        w1_off=meta["w1_off"], w1_rows=meta["w1_rows"],
        w2_off=meta["w2_off"], w3_off=meta["w3_off"], w4_off=meta["w4_off"],
        hid_rows=meta["hid_rows"], bias_off=meta["bias_off"],
    )

    vmem = pl.BlockSpec(memory_space=pltpu.MemorySpace.VMEM)
    smem = pl.BlockSpec(memory_space=pltpu.MemorySpace.SMEM)

    out = pl.pallas_call(
        kernel,
        out_shape=jax.ShapeDtypeStruct((b_pad, LANE), jnp.float32),
        in_specs=[vmem, vmem, smem],
        out_specs=vmem,
    )(x_p, slab, alphas)

    return out[:batch, :meta["out_sz"]]


# --------------------------------------------------------------------------
# Pure-JAX reference
# --------------------------------------------------------------------------
def dqn_forward_ref(x, params, alphas):
    (w1, b1), (w2, b2), (w3, b3), (w4, b4) = params

    def prelu(h, a):
        return jnp.where(h >= 0, h, a * h)

    h = prelu(x @ w1 + b1, alphas[0])
    h = prelu(h @ w2 + b2, alphas[1])
    h = prelu(h @ w3 + b3, alphas[2])
    return h @ w4 + b4


if __name__ == "__main__":
    # DQN(lr, layer_sizes=[input, hidden, output]); small synthetic config.
    layer_sizes = [12, 32, 3]   # slime-volleyball-like obs -> 3 actions
    batch = 8

    key = jax.random.PRNGKey(0)
    key, kx = jax.random.split(key)
    x = jax.random.normal(kx, (batch, layer_sizes[0]), jnp.float32)

    params, alphas = init_dqn_params(key, layer_sizes)
    slab, meta = pack_dqn_params(params)

    logits = dqn_forward(x, slab, alphas, meta)
    logits = jax.block_until_ready(logits)

    ref = dqn_forward_ref(x, params, alphas)
    assert logits.shape == (batch, layer_sizes[2])
    assert jnp.allclose(logits, ref, atol=1e-5, rtol=1e-5)

    print("KERNEL_OK")
</pallas_src>

<mosaic_0001>
module attributes {stable_mosaic.version = 11 : i64} {
  func.func @dqn_kernel(%arg0: memref<8x16xf32, #tpu.memory_space<vmem>>, %arg1: memref<408x128xf32, #tpu.memory_space<vmem>>, %arg2: memref<4xf32, #tpu.memory_space<smem>>, %arg3: memref<8x128xf32, #tpu.memory_space<vmem>>) attributes {dimension_semantics = [], scalar_prefetch = 0 : i64, scratch_operands = 0 : i64, tpu.core_type = #tpu.core_type<tc>} {
    %c0 = arith.constant 0 : index
    %c0_0 = arith.constant 0 : index
    %0 = vector.load %arg0[%c0, %c0_0] : memref<8x16xf32, #tpu.memory_space<vmem>>, vector<8x16xf32>
    %c0_1 = arith.constant 0 : index
    %c0_2 = arith.constant 0 : index
    %1 = vector.load %arg1[%c0_1, %c0_2] : memref<408x128xf32, #tpu.memory_space<vmem>>, vector<16x128xf32>
    %c16 = arith.constant 16 : index
    %c0_3 = arith.constant 0 : index
    %2 = vector.load %arg1[%c16, %c0_3] : memref<408x128xf32, #tpu.memory_space<vmem>>, vector<128x128xf32>
    %c144 = arith.constant 144 : index
    %c0_4 = arith.constant 0 : index
    %3 = vector.load %arg1[%c144, %c0_4] : memref<408x128xf32, #tpu.memory_space<vmem>>, vector<128x128xf32>
    %c272 = arith.constant 272 : index
    %c0_5 = arith.constant 0 : index
    %4 = vector.load %arg1[%c272, %c0_5] : memref<408x128xf32, #tpu.memory_space<vmem>>, vector<128x128xf32>
    %c400 = arith.constant 400 : index
    %c0_6 = arith.constant 0 : index
    %5 = vector.load %arg1[%c400, %c0_6] : memref<408x128xf32, #tpu.memory_space<vmem>>, vector<8x128xf32>
    %c0_7 = arith.constant 0 : index
    %6 = memref.load %arg2[%c0_7] : memref<4xf32, #tpu.memory_space<smem>>
    %c1 = arith.constant 1 : index
    %7 = memref.load %arg2[%c1] : memref<4xf32, #tpu.memory_space<smem>>
    %c2 = arith.constant 2 : index
    %8 = memref.load %arg2[%c2] : memref<4xf32, #tpu.memory_space<smem>>
    %cst = arith.constant dense<0.000000e+00> : vector<8x128xf32>
    %9 = tpu.matmul %0, %1, %cst {dimension_numbers = #tpu.dot_dimension_numbers<[1], [0], [0], [1], [0, 0, 1, 1], [], []>} : vector<8x16xf32>, vector<16x128xf32>, vector<8x128xf32> -> vector<8x128xf32>
    %10 = vector.extract_strided_slice %5 {offsets = [0, 0], sizes = [1, 128], strides = [1, 1]} : vector<8x128xf32> to vector<1x128xf32>
    %11 = vector.shape_cast %10 : vector<1x128xf32> to vector<128xf32>
    %12 = vector.shape_cast %11 : vector<128xf32> to vector<1x128xf32>
    %13 = vector.broadcast %12 : vector<1x128xf32> to vector<8x128xf32>
    %14 = arith.addf %9, %13 : vector<8x128xf32>
    %cst_8 = arith.constant 0.000000e+00 : f32
    %15 = vector.broadcast %cst_8 : f32 to vector<8x128xf32>
    %16 = arith.cmpf oge, %14, %15 : vector<8x128xf32>
    %17 = vector.broadcast %6 : f32 to vector<8x128xf32>
    %18 = arith.mulf %17, %14 : vector<8x128xf32>
    %19 = arith.select %16, %14, %18 : vector<8x128xi1>, vector<8x128xf32>
    %cst_9 = arith.constant dense<0.000000e+00> : vector<8x128xf32>
    %20 = tpu.matmul %19, %2, %cst_9 {dimension_numbers = #tpu.dot_dimension_numbers<[1], [0], [0], [1], [0, 0, 1, 1], [], []>} : vector<8x128xf32>, vector<128x128xf32>, vector<8x128xf32> -> vector<8x128xf32>
    %21 = vector.extract_strided_slice %5 {offsets = [1, 0], sizes = [1, 128], strides = [1, 1]} : vector<8x128xf32> to vector<1x128xf32>
    %22 = vector.shape_cast %21 : vector<1x128xf32> to vector<128xf32>
    %23 = vector.shape_cast %22 : vector<128xf32> to vector<1x128xf32>
    %24 = vector.broadcast %23 : vector<1x128xf32> to vector<8x128xf32>
    %25 = arith.addf %20, %24 : vector<8x128xf32>
    %cst_10 = arith.constant 0.000000e+00 : f32
    %26 = vector.broadcast %cst_10 : f32 to vector<8x128xf32>
    %27 = arith.cmpf oge, %25, %26 : vector<8x128xf32>
    %28 = vector.broadcast %7 : f32 to vector<8x128xf32>
    %29 = arith.mulf %28, %25 : vector<8x128xf32>
    %30 = arith.select %27, %25, %29 : vector<8x128xi1>, vector<8x128xf32>
    %cst_11 = arith.constant dense<0.000000e+00> : vector<8x128xf32>
    %31 = tpu.matmul %30, %3, %cst_11 {dimension_numbers = #tpu.dot_dimension_numbers<[1], [0], [0], [1], [0, 0, 1, 1], [], []>} : vector<8x128xf32>, vector<128x128xf32>, vector<8x128xf32> -> vector<8x128xf32>
    %32 = vector.extract_strided_slice %5 {offsets = [2, 0], sizes = [1, 128], strides = [1, 1]} : vector<8x128xf32> to vector<1x128xf32>
    %33 = vector.shape_cast %32 : vector<1x128xf32> to vector<128xf32>
    %34 = vector.shape_cast %33 : vector<128xf32> to vector<1x128xf32>
    %35 = vector.broadcast %34 : vector<1x128xf32> to vector<8x128xf32>
    %36 = arith.addf %31, %35 : vector<8x128xf32>
    %cst_12 = arith.constant 0.000000e+00 : f32
    %37 = vector.broadcast %cst_12 : f32 to vector<8x128xf32>
    %38 = arith.cmpf oge, %36, %37 : vector<8x128xf32>
    %39 = vector.broadcast %8 : f32 to vector<8x128xf32>
    %40 = arith.mulf %39, %36 : vector<8x128xf32>
    %41 = arith.select %38, %36, %40 : vector<8x128xi1>, vector<8x128xf32>
    %cst_13 = arith.constant dense<0.000000e+00> : vector<8x128xf32>
    %42 = tpu.matmul %41, %4, %cst_13 {dimension_numbers = #tpu.dot_dimension_numbers<[1], [0], [0], [1], [0, 0, 1, 1], [], []>} : vector<8x128xf32>, vector<128x128xf32>, vector<8x128xf32> -> vector<8x128xf32>
    %43 = vector.extract_strided_slice %5 {offsets = [3, 0], sizes = [1, 128], strides = [1, 1]} : vector<8x128xf32> to vector<1x128xf32>
    %44 = vector.shape_cast %43 : vector<1x128xf32> to vector<128xf32>
    %45 = vector.shape_cast %44 : vector<128xf32> to vector<1x128xf32>
    %46 = vector.broadcast %45 : vector<1x128xf32> to vector<8x128xf32>
    %47 = arith.addf %42, %46 : vector<8x128xf32>
    %c0_14 = arith.constant 0 : index
    %c0_15 = arith.constant 0 : index
    %48 = vector.load %arg3[%c0_14, %c0_15] : memref<8x128xf32, #tpu.memory_space<vmem>>, vector<8x128xf32>
    tpu.vector_store %arg3[%c0_14, %c0_15], %47 {strides = array<i32>} : memref<8x128xf32, #tpu.memory_space<vmem>>, vector<8x128xf32>,
    return
  }
}

</mosaic_0001>

<bundles_post_ra>
// kernel: tpu_custom_call.1
= control target key start
LH: loop header
LB: loop body
LE: loop exit
PB: predicated region body
PF: predicated region fallthrough
CT: control target
= control target key end

     0   :  { %8 = vsyncpa [#allocation3], 0  ;;  %s806_s0 = inlined_call_operand.hbm [shape: f32[8,16], index: 0, kind: input, shape index: {}]   ;;  %s807_s1 = inlined_call_operand.hbm [shape: f32[408,128], index: 1, kind: input, shape index: {}]   ;;  %s808_s2 = inlined_call_operand.vmem [shape: f32[4], index: 2, kind: input, shape index: {}]   ;;  %s809_s3 = inlined_call_operand.hbm [shape: f32[8,128], index: 3, kind: output, shape index: {}]  }
   0x1   :  { %9 = vsyncpa [#allocation7], 0 }
   0x2   :  { %10 = vsyncpa [#allocation5], 0 }
   0x3   :  { %11 = vsyncpa [#allocation4], 0  ;;  %s696_s12 = smov [#allocation2]   ;;  %s697_s14 = smov [#allocation6]  }
   0x4   :  { %s18_s13 = sshll.u32 %s696_s12, 4  ;;  %s27_s15 = sshll.u32 %s697_s14, 4  ;;  %s19_s13 = int_to_ptr.vmem [resolvable:$true] %s18_s13  ;;  %s28_s15 = int_to_ptr.vmem [resolvable:$true] %s27_s15 }
   0x5   :  { %s624_s16 = scalar_lea.vmem %s19_s13, 128  ;;  %p629_p1 = scmp.lt.s32.totalorder %s19_s13, %s19_s13 }
   0x6   :  { %p625_p0 = scmp.ne.s32.totalorder %s19_s13, %s624_s16  ;;  %p630_p2 = scmp.lt.s32.totalorder %s624_s16, %s624_s16 }
   0x8   :  { %p631_p3 = por %p630_p2, %p629_p1 }
   0xa   :  { %p632_p4 = pnand %p631_p3, %p625_p0 }
   0xc   :  { %635 = shalt.err (!%p632_p4)
}
   0xd   :  { %21 = dma.hbm_to_vmem [thread:$0]  %s806_s0, 128, %s19_s13, [#allocation3]  }
   0xe   :  { %s644_s19 = scalar_lea.vmem %s28_s15, 6528  ;;  %p649_p6 = scmp.lt.s32.totalorder %s28_s15, %s28_s15 }
   0xf   :  { %p645_p5 = scmp.ne.s32.totalorder %s28_s15, %s644_s19  ;;  %p650_p7 = scmp.lt.s32.totalorder %s644_s19, %s644_s19 }
  0x11   :  { %p651_p8 = por %p650_p7, %p649_p6 }
  0x13   :  { %p652_p9 = pnand %p651_p8, %p645_p5 }
  0x15   :  { %655 = shalt.err (!%p652_p9)
}
  0x16   :  { %s698_s20 = smov 128   ;;  %s699_s21 = smov 8  }
  0x17   :  { %33 = dma.hbm_to_vmem [thread:$0]  %s807_s1, 6528, %s28_s15, [#allocation7], %s698_s20, %s698_s20, %s699_s21  }
  0x18   :  { %s40_s26 = sshll.u32 %s808_s2, 4  ;;  %s41_s26 = int_to_ptr.vmem [resolvable:$true] %s40_s26 }
  0x19   :  { %s656_s27 = scalar_lea.vmem %s41_s26, 16  ;;  %p661_p11 = scmp.lt.s32.totalorder %s41_s26, %s41_s26 }
  0x1a   :  { %p657_p10 = scmp.ne.s32.totalorder %s41_s26, %s656_s27  ;;  %p662_p12 = scmp.lt.s32.totalorder %s656_s27, %s656_s27 }
  0x1c   :  { %p663_p13 = por %p662_p12, %p661_p11 }
  0x1e   :  { %p664_p0 = pnand %p663_p13, %p657_p10 }
  0x20   :  { %667 = shalt.err (!%p664_p0)
}
  0x21   :  { %s700_s0 = smov [#allocation8]  }
  0x22   :  { %43 = dma.vmem_to_smem %s41_s26, 16, %s700_s0, [#allocation5]  }
  0x23   :  { %688 = dma.done.wait [#allocation3], 128  }
  0x24   :  { %689 = vsyncadd [#allocation3], 4294967168 }
  0x25   :  { %690 = dma.done.wait [#allocation7], 6528  }
  0x26   :  { %691 = vsyncadd [#allocation7], 4294960768 }
  0x27   :  { %692 = dma.done.wait [#allocation5], 16  }
  0x28   :  { %693 = vsyncadd [#allocation5], 4294967280 }
  0x29   :  { %53 = sfence }
  0x2a   :  { %v56_v0 = vld [vmem:[#allocation6 + $0x8] sm:$0xff]  ;;  %v701_v1 = vmov 0.0   ;;  %v55_v2 = vld [vmem:[#allocation6] sm:$0xff]  ;;  %vm702_vm0 = vmmov 0   ;;  %v54_v4 = vld [vmem:[#allocation2] sm:$0xff]  ;;  %vm113_vm1 = vcmask 130048   ;;  %v109_v33 = vlaneseq }
  0x2b   :  { %496 = vmatprep.subr.mxu0 %v701_v1  ;;  %500 = vmatprep.mubr.msk.f32.mxu0 %vm702_vm0, %v701_v1  ;;  %v72_v3 = vld [vmem:[#allocation6 + $0x88] sm:$0xff]  ;;  %v71_v5 = vld [vmem:[#allocation6 + $0x80] sm:$0xff]  ;;  %v70_v6 = vld [vmem:[#allocation6 + $0x78] sm:$0xff]  ;;  %s106_s1 = sld [smem:[#allocation8]]  ;;  %s703_s29 = smov [#allocation9]  }
  0x2c   :  { %497 = vmatpush3.msra.mxu0 %v56_v0  ;;  %503 = vmatprep.subr.mxu1 %v701_v1  ;;  %v69_v7 = vld [vmem:[#allocation6 + $0x70] sm:$0xff]  ;;  %v68_v8 = vld [vmem:[#allocation6 + $0x68] sm:$0xff]  ;;  %v67_v9 = vld [vmem:[#allocation6 + $0x60] sm:$0xff]  ;;  %v772_v34 = vshrl.u32 %v109_v33, 7  ;;  %s439_s2 = sld [smem:[#allocation8 + $0x1]]  ;;  %s428_s30 = sshll.u32 %s703_s29, 4  ;;  %s429_s30 = int_to_ptr.vmem [resolvable:$true] %s428_s30 }
  0x2d   :  { %498 = vmatprep.subr.mxu0 %v701_v1  ;;  %504 = vmatpush3.msra.mxu1 %v72_v3  ;;  %v66_v10 = vld [vmem:[#allocation6 + $0x58] sm:$0xff]  ;;  %v65_v11 = vld [vmem:[#allocation6 + $0x50] sm:$0xff]  ;;  %v64_v12 = vld [vmem:[#allocation6 + $0x48] sm:$0xff]  ;;  %s440_s28 = sld [smem:[#allocation8 + $0x2]]  ;;  %s668_s4 = scalar_lea.vmem %s429_s30, 128 }
  0x2e   :  { %499 = vmatpush3.msra.mxu0 %v55_v2  ;;  %505 = vmatprep.subr.mxu1 %v701_v1  ;;  %v63_v13 = vld [vmem:[#allocation6 + $0x40] sm:$0xff]  ;;  %v62_v14 = vld [vmem:[#allocation6 + $0x38] sm:$0xff]  ;;  %v61_v15 = vld [vmem:[#allocation6 + $0x30] sm:$0xff]  ;;  %v111_v35 = vsub.s32 0, %v772_v34  ;;  %v193_v60 = vsub.s32 1, %v772_v34  ;;  %p669_p1 = scmp.ne.s32.totalorder %s429_s30, %s668_s4  ;;  %p673_p2 = scmp.lt.s32.totalorder %s429_s30, %s429_s30 }
  0x2f   :  { %501 = vmatmul.mubr.msk.f32.vlgmr.msra.gmra.mxu0 %vm113_vm1, %v54_v4  ;;  %506 = vmatpush3.msra.mxu1 %v71_v5  ;;  %v60_v16 = vld [vmem:[#allocation6 + $0x28] sm:$0xff]  ;;  %v59_v17 = vld [vmem:[#allocation6 + $0x20] sm:$0xff]  ;;  %v58_v18 = vld [vmem:[#allocation6 + $0x18] sm:$0xff]  ;;  %p674_p3 = scmp.lt.s32.totalorder %s668_s4, %s668_s4 }
  0x30   :  { %507 = vmatprep.subr.mxu1 %v701_v1  ;;  %535 = vmatprep.mubr.msk.f32.mxu1 %vm702_vm0, %v701_v1  ;;  %v57_v19 = vld [vmem:[#allocation6 + $0x10] sm:$0xff]  ;;  %v88_v20 = vld [vmem:[#allocation6 + $0x108] sm:$0xff]  ;;  %v87_v21 = vld [vmem:[#allocation6 + $0x100] sm:$0xff] }
  0x31   :  { %508 = vmatpush3.msra.mxu1 %v70_v6  ;;  %538 = vmatprep.subr.mxu0 %v701_v1  ;;  %v86_v22 = vld [vmem:[#allocation6 + $0xf8] sm:$0xff]  ;;  %v85_v23 = vld [vmem:[#allocation6 + $0xf0] sm:$0xff]  ;;  %v84_v24 = vld [vmem:[#allocation6 + $0xe8] sm:$0xff]  ;;  %v188_v39 = vstv %s106_s1  ;;  %p675_p4 = por %p674_p3, %p673_p2 }
  0x32   :  { %509 = vmatprep.subr.mxu1 %v701_v1  ;;  %570 = vmatprep.mubr.msk.f32.mxu0 %vm702_vm0, %v701_v1  ;;  %v83_v25 = vld [vmem:[#allocation6 + $0xe0] sm:$0xff]  ;;  %v82_v26 = vld [vmem:[#allocation6 + $0xd8] sm:$0xff]  ;;  %v81_v27 = vld [vmem:[#allocation6 + $0xd0] sm:$0xff]  ;;  %v266_v63 = vstv %s439_s2 }
  0x33   :  { %510 = vmatpush3.msra.mxu1 %v69_v7  ;;  %539 = vmatpush3.msra.mxu0 %v88_v20  ;;  %v80_v28 = vld [vmem:[#allocation6 + $0xc8] sm:$0xff]  ;;  %v79_v29 = vld [vmem:[#allocation6 + $0xc0] sm:$0xff]  ;;  %v78_v30 = vld [vmem:[#allocation6 + $0xb8] sm:$0xff]  ;;  %p676_p5 = pnand %p675_p4, %p669_p1 }
  0x34   :  { %511 = vmatprep.subr.mxu1 %v701_v1  ;;  %540 = vmatprep.subr.mxu0 %v701_v1  ;;  %v77_v31 = vld [vmem:[#allocation6 + $0xb0] sm:$0xff]  ;;  %v76_v32 = vld [vmem:[#allocation6 + $0xa8] sm:$0xff]  ;;  %v75_v44 = vld [vmem:[#allocation6 + $0xa0] sm:$0xff] }
  0x35   :  { %512 = vmatpush3.msra.mxu1 %v68_v8  ;;  %541 = vmatpush3.msra.mxu0 %v87_v21  ;;  %v775_v36 = vld [vmem:[#allocation6 + $0x190] sm:$0xff]  ;;  %v74_v45 = vld [vmem:[#allocation6 + $0x98] sm:$0xff]  ;;  %v104_v47 = vld [vmem:[#allocation6 + $0x188] sm:$0xff]  ;;  %v271_v8 = vsub.s32 2, %v772_v34 }
  0x36   :  { %513 = vmatprep.subr.mxu1 %v701_v1  ;;  %542 = vmatprep.subr.mxu0 %v701_v1  ;;  %v112_v37 = vrot.slane %v775_v36, %v111_v35  ;;  %v73_v46 = vld [vmem:[#allocation6 + $0x90] sm:$0xff]  ;;  %v103_v48 = vld [vmem:[#allocation6 + $0x180] sm:$0xff]  ;;  %v102_v49 = vld [vmem:[#allocation6 + $0x178] sm:$0xff]  ;;  %v194_v61 = vrot.slane %v775_v36, %v193_v60 }
  0x37   :  { %514 = vmatpush3.msra.mxu1 %v67_v9  ;;  %543 = vmatpush3.msra.mxu0 %v86_v22  ;;  %v101_v50 = vld [vmem:[#allocation6 + $0x170] sm:$0xff]  ;;  %v100_v51 = vld [vmem:[#allocation6 + $0x168] sm:$0xff]  ;;  %v99_v52 = vld [vmem:[#allocation6 + $0x160] sm:$0xff]  ;;  %v272_v9 = vrot.slane %v775_v36, %v271_v8 }
  0x38   :  { %515 = vmatprep.subr.mxu1 %v701_v1  ;;  %544 = vmatprep.subr.mxu0 %v701_v1  ;;  %v98_v53 = vld [vmem:[#allocation6 + $0x158] sm:$0xff]  ;;  %v97_v54 = vld [vmem:[#allocation6 + $0x150] sm:$0xff]  ;;  %v96_v55 = vld [vmem:[#allocation6 + $0x148] sm:$0xff] }
  0x39   :  { %516 = vmatpush3.msra.mxu1 %v66_v10  ;;  %545 = vmatpush3.msra.mxu0 %v85_v23  ;;  %v95_v56 = vld [vmem:[#allocation6 + $0x140] sm:$0xff]  ;;  %v94_v57 = vld [vmem:[#allocation6 + $0x138] sm:$0xff]  ;;  %v93_v58 = vld [vmem:[#allocation6 + $0x130] sm:$0xff] }
  0x3a   :  { %517 = vmatprep.subr.mxu1 %v701_v1  ;;  %546 = vmatprep.subr.mxu0 %v701_v1  ;;  %v92_v59 = vld [vmem:[#allocation6 + $0x128] sm:$0xff]  ;;  %v91_v5 = vld [vmem:[#allocation6 + $0x120] sm:$0xff]  ;;  %v90_v6 = vld [vmem:[#allocation6 + $0x118] sm:$0xff] }
  0x3b   :  { %518 = vmatpush3.msra.mxu1 %v65_v11  ;;  %547 = vmatpush3.msra.mxu0 %v84_v24  ;;  %v89_v7 = vld [vmem:[#allocation6 + $0x110] sm:$0xff]  ;;  %v344_v11 = vstv %s440_s28 }
  0x3c   :  { %519 = vmatprep.subr.mxu1 %v701_v1  ;;  %548 = vmatprep.subr.mxu0 %v701_v1 }
  0x3d   :  { %520 = vmatpush3.msra.mxu1 %v64_v12  ;;  %549 = vmatpush3.msra.mxu0 %v83_v25 }
  0x3e   :  { %521 = vmatprep.subr.mxu1 %v701_v1  ;;  %550 = vmatprep.subr.mxu0 %v701_v1 }
  0x3f   :  { %522 = vmatpush3.msra.mxu1 %v63_v13  ;;  %551 = vmatpush3.msra.mxu0 %v82_v26 }
  0x40   :  { %523 = vmatprep.subr.mxu1 %v701_v1  ;;  %552 = vmatprep.subr.mxu0 %v701_v1 }
  0x41   :  { %524 = vmatpush3.msra.mxu1 %v62_v14  ;;  %553 = vmatpush3.msra.mxu0 %v81_v27 }
  0x42   :  { %525 = vmatprep.subr.mxu1 %v701_v1  ;;  %554 = vmatprep.subr.mxu0 %v701_v1 }
  0x43   :  { %526 = vmatpush3.msra.mxu1 %v61_v15  ;;  %555 = vmatpush3.msra.mxu0 %v80_v28 }
  0x44   :  { %527 = vmatprep.subr.mxu1 %v701_v1  ;;  %556 = vmatprep.subr.mxu0 %v701_v1 }
  0x45   :  { %528 = vmatpush3.msra.mxu1 %v60_v16  ;;  %557 = vmatpush3.msra.mxu0 %v79_v29  ;;  %v349_v16 = vsub.s32 3, %v772_v34 }
  0x46   :  { %529 = vmatprep.subr.mxu1 %v701_v1  ;;  %558 = vmatprep.subr.mxu0 %v701_v1 }
  0x47   :  { %530 = vmatpush3.msra.mxu1 %v59_v17  ;;  %559 = vmatpush3.msra.mxu0 %v78_v30  ;;  %v350_v17 = vrot.slane %v775_v36, %v349_v16 }
  0x48   :  { %531 = vmatprep.subr.mxu1 %v701_v1  ;;  %560 = vmatprep.subr.mxu0 %v701_v1 }
  0x49   :  { %532 = vmatpush3.msra.mxu1 %v58_v18  ;;  %561 = vmatpush3.msra.mxu0 %v77_v31 }
  0x4a   :  { %533 = vmatprep.subr.mxu1 %v701_v1  ;;  %562 = vmatprep.subr.mxu0 %v701_v1 }
  0x4b   :  { %534 = vmatpush3.msra.mxu1 %v57_v19  ;;  %563 = vmatpush3.msra.mxu0 %v76_v32 }
  0x4c   :  { %573 = vmatprep.subr.mxu1 %v701_v1  ;;  %564 = vmatprep.subr.mxu0 %v701_v1 }
  0x4d   :  { %565 = vmatpush3.msra.mxu0 %v75_v44 }
  0x4e   :  { %566 = vmatprep.subr.mxu0 %v701_v1 }
  0x4f   :  { %567 = vmatpush3.msra.mxu0 %v74_v45 }
  0x50   :  { %568 = vmatprep.subr.mxu0 %v701_v1 }
  0x51   :  { %569 = vmatpush3.msra.mxu0 %v73_v46 }
  0xef   :  { %v183_v38 = vpop.f32.mrf.mxu0 }
  0xf0   :  { %v184_v40 = vadd.f32 %v183_v38, %v112_v37 }
  0xf1   :  { %v502_v41 = vpop.f32.mrf.mxu0 }
  0xf2   :  { %v189_v42 = vmul.f32 %v188_v39, %v184_v40  ;;  %vm187_vm2 = vcmp.ge.f32.partialorder %v184_v40, 0.0 }
  0xf4   :  { %v190_v43 = vsel %vm187_vm2, %v184_v40, %v189_v42 }
  0xf5   :  { %536 = vmatmul.mubr.f32.vlgmr.msra.gmra.mxu1 %v190_v43 }
  0xf6   :  { %605 = vmatprep.mubr.msk.f32.mxu1 %vm702_vm0, %v701_v1  ;;  %574 = vmatpush3.msra.mxu1 %v104_v47 }
  0xf7   :  { %575 = vmatprep.subr.mxu1 %v701_v1 }
  0xf8   :  { %576 = vmatpush3.msra.mxu1 %v103_v48 }
  0xf9   :  { %577 = vmatprep.subr.mxu1 %v701_v1 }
  0xfa   :  { %578 = vmatpush3.msra.mxu1 %v102_v49 }
  0xfb   :  { %579 = vmatprep.subr.mxu1 %v701_v1 }
  0xfc   :  { %580 = vmatpush3.msra.mxu1 %v101_v50 }
  0xfd   :  { %581 = vmatprep.subr.mxu1 %v701_v1 }
  0xfe   :  { %582 = vmatpush3.msra.mxu1 %v100_v51 }
  0xff   :  { %583 = vmatprep.subr.mxu1 %v701_v1 }
 0x100   :  { %584 = vmatpush3.msra.mxu1 %v99_v52 }
 0x101   :  { %585 = vmatprep.subr.mxu1 %v701_v1 }
 0x102   :  { %586 = vmatpush3.msra.mxu1 %v98_v53 }
 0x103   :  { %587 = vmatprep.subr.mxu1 %v701_v1 }
 0x104   :  { %588 = vmatpush3.msra.mxu1 %v97_v54 }
 0x105   :  { %589 = vmatprep.subr.mxu1 %v701_v1 }
 0x106   :  { %590 = vmatpush3.msra.mxu1 %v96_v55 }
 0x107   :  { %591 = vmatprep.subr.mxu1 %v701_v1 }
 0x108   :  { %592 = vmatpush3.msra.mxu1 %v95_v56 }
 0x109   :  { %593 = vmatprep.subr.mxu1 %v701_v1 }
 0x10a   :  { %594 = vmatpush3.msra.mxu1 %v94_v57 }
 0x10b   :  { %595 = vmatprep.subr.mxu1 %v701_v1 }
 0x10c   :  { %596 = vmatpush3.msra.mxu1 %v93_v58 }
 0x10d   :  { %597 = vmatprep.subr.mxu1 %v701_v1 }
 0x10e   :  { %598 = vmatpush3.msra.mxu1 %v92_v59 }
 0x10f   :  { %599 = vmatprep.subr.mxu1 %v701_v1 }
 0x110   :  { %600 = vmatpush3.msra.mxu1 %v91_v5 }
 0x111   :  { %601 = vmatprep.subr.mxu1 %v701_v1 }
 0x112   :  { %602 = vmatpush3.msra.mxu1 %v90_v6 }
 0x113   :  { %603 = vmatprep.subr.mxu1 %v701_v1 }
 0x114   :  { %604 = vmatpush3.msra.mxu1 %v89_v7 }
 0x1b5   :  { %v261_v62 = vpop.f32.mrf.mxu1 }
 0x1b6   :  { %v262_v0 = vadd.f32 %v261_v62, %v194_v61 }
 0x1b7   :  { %v537_v2 = vpop.f32.mrf.mxu1 }
 0x1b8   :  { %vm265_vm3 = vcmp.ge.f32.partialorder %v262_v0, 0.0  ;;  %v267_v3 = vmul.f32 %v266_v63, %v262_v0 }
 0x1ba   :  { %v268_v4 = vsel %vm265_vm3, %v262_v0, %v267_v3 }
 0x1bb   :  { %571 = vmatmul.mubr.f32.vlgmr.msra.gmra.mxu0 %v268_v4 }
 0x27b   :  { %v339_v10 = vpop.f32.mrf.mxu0 }
 0x27c   :  { %v340_v12 = vadd.f32 %v339_v10, %v272_v9 }
 0x27d   :  { %v572_v13 = vpop.f32.mrf.mxu0 }
 0x27e   :  { %vm343_vm4 = vcmp.ge.f32.partialorder %v340_v12, 0.0  ;;  %v345_v14 = vmul.f32 %v344_v11, %v340_v12 }
 0x280   :  { %v346_v15 = vsel %vm343_vm4, %v340_v12, %v345_v14 }
 0x281   :  { %606 = vmatmul.mubr.f32.vlgmr.msra.gmra.mxu1 %v346_v15 }
 0x341   :  { %v417_v1 = vpop.f32.mrf.mxu1 }
 0x342   :  { %v418_v18 = vadd.f32 %v417_v1, %v350_v17 }
 0x343   :  { %v607_v19 = vpop.f32.mrf.mxu1 }
 0x344   :  { %421 = vst [vmem:[#allocation9] sm:$0xff] %v418_v18 }
 0x345   :  { %679 = shalt.err (!%p676_p5)
}
 0x346   :  { %431 = dma.vmem_to_hbm [thread:$0]  %s429_s30, 128, %s809_s3, [#allocation4]  }
 0x347   :  { %694 = dma.done.wait [#allocation4], 128  }
 0x348   :  { %695 = vsyncadd [#allocation4], 4294967168 }
 0x349   :  { %435 = vsyncpa [#allocation3], 1 }
 0x34a   :  { %436 = vsyncpa [#allocation7], 1 }
 0x34b   :  { %437 = vsyncpa [#allocation4], 1 }
 0x34c   :  { %438 = vsyncpa [#allocation5], 1 }

</bundles_post_ra>
